<compile_context>
chip_gen: v7x
topology: tpu7x:2x2x1
jax: 0.10.0
libtpu: 0.0.40
codegen_flags: <defaults>
</compile_context>

<pallas_src>
import functools

import jax
import jax.numpy as jnp
from jax.experimental import pallas as pl
from jax.experimental.pallas import tpu as pltpu

# ---- module hyper-parameters (small, consistent with the nn.Module) ----
IN_DIMS   = 32                        # in_dims
TOKEN_DIM = 64                        # token_dim
NUM_HEADS = 2
HID       = TOKEN_DIM * NUM_HEADS     # 128 (to_query / to_key / Proj width)
SCALE     = TOKEN_DIM ** (-0.5)       # cancels inside normalize(A, dim=1)
EPS       = 1e-12                     # torch.nn.functional.normalize eps

B = 2      # batch
N = 16     # tokens


def _eaa_kernel(bsz, ntok,
                x_ref, y_ref, wq_ref, bq_ref, wk_ref, bk_ref,
                wp_ref, bp_ref, wf_ref, bf_ref, o_ref):
    bn = bsz * ntok

    # Query projection with the folded w_g column group: (BN, 2*HID), where
    # lanes [0:HID) are q_un and lane HID is q_un @ w_g (rest zero padding).
    qext = jnp.dot(x_ref[...], wq_ref[...],
                   preferred_element_type=jnp.float32) + bq_ref[...]     # (BN, 2*HID)
    q_un  = qext[:, :HID]                                                # (BN, HID)
    qw_un = qext[:, HID:HID + 1]                                         # (BN, 1)

    # Key projection.
    k_un = jnp.dot(y_ref[...], wk_ref[...],
                   preferred_element_type=jnp.float32) + bk_ref[...]     # (BN, HID)

    # F.normalize(dim=-1): x / max(||x||, eps) == x * rsqrt(max(||x||^2, eps^2))
    inv_q = jax.lax.rsqrt(
        jnp.maximum(jnp.sum(q_un * q_un, axis=-1, keepdims=True), EPS * EPS))
    inv_k = jax.lax.rsqrt(
        jnp.maximum(jnp.sum(k_un * k_un, axis=-1, keepdims=True), EPS * EPS))
    q = q_un * inv_q
    k = k_un * inv_k
    # query_weight = normalize(q_un) @ w_g == (q_un @ w_g) * inv_q
    qw = qw_un * inv_q                                                   # (BN, 1)

    # Per-batch token-axis reductions on the 3-D view.
    q3  = q.reshape(bsz, ntok, HID)
    k3  = k.reshape(bsz, ntok, HID)
    qw3 = qw.reshape(bsz, ntok, 1)

    # A = normalize(qw * scale, dim=tokens); positive scale cancels, omitted.
    a = qw3 * jax.lax.rsqrt(
        jnp.maximum(jnp.sum(qw3 * qw3, axis=1, keepdims=True), EPS * EPS))
    g  = jnp.sum(a * q3, axis=1, keepdims=True)                          # (B, 1, HID)
    gk = (g * k3).reshape(bn, HID)                                       # (BN, HID)

    # out = Proj(G * key) + query ; out = final(out)
    out = jnp.dot(gk, wp_ref[...],
                  preferred_element_type=jnp.float32) + bp_ref[...] + q  # (BN, HID)
    out = jnp.dot(out, wf_ref[...],
                  preferred_element_type=jnp.float32) + bf_ref[...]      # (BN, TOKEN_DIM)
    o_ref[...] = out.reshape(bsz, ntok, TOKEN_DIM).astype(o_ref.dtype)


def prepare_params(params):
    """One-time packing of nn.Module parameters into kernel operands.

    Call once (e.g. at model load); the packed tuple is reused by every
    forward so no weight-packing XLA ops run per call.
    """
    wq, bq, wk, bk, wg, wp, bp, wf, bf = params
    wg_col = wg.reshape(HID, 1)                 # torch stores w_g as (HID, 1)
    wqg = wq @ wg_col                           # (Din, 1): fold w_g into to_query
    bqg = bq @ wg_col                           # (1, 1)
    # Lane-pad the folded column group to a full 128 lanes so the fused query
    # projection output is a whole number of lane tiles: (Din, 2*HID).
    wq_big = jnp.concatenate([wq, jnp.pad(wqg, ((0, 0), (0, HID - 1)))], axis=1)
    bq_big = jnp.concatenate([bq, jnp.pad(bqg, ((0, 0), (0, HID - 1)))], axis=1)
    return (wq_big, bq_big, wk, bk, wp, bp, wf, bf)


@jax.jit
def efficient_additive_attention(x, y, packed):
    """x, y: (B, N, IN_DIMS) float32 -> (B, N, TOKEN_DIM) float32."""
    wq_big, bq_big, wk, bk, wp, bp, wf, bf = packed
    Bx, Nx, Din = x.shape
    BN = Bx * Nx

    # Contiguous reshapes only (metadata under jit) - no per-call packing ops.
    x2 = x.reshape(BN, Din)
    y2 = y.reshape(BN, Din)

    flops = 2 * BN * (Din * 2 * HID + Din * HID + HID * HID + HID * TOKEN_DIM)
    bytes_accessed = 4 * (x2.size + y2.size + wq_big.size + bq_big.size
                          + wk.size + bk.size + wp.size + bp.size
                          + wf.size + bf.size + BN * TOKEN_DIM)

    vmem = lambda: pl.BlockSpec(memory_space=pltpu.MemorySpace.VMEM)
    return pl.pallas_call(
        functools.partial(_eaa_kernel, Bx, Nx),
        out_shape=jax.ShapeDtypeStruct((Bx, Nx, TOKEN_DIM), jnp.float32),
        in_specs=[vmem() for _ in range(10)],
        out_specs=vmem(),
        cost_estimate=pl.CostEstimate(flops=flops,
                                      transcendentals=2 * BN + Bx,
                                      bytes_accessed=bytes_accessed),
    )(x2, y2, wq_big, bq_big, wk, bk, wp, bp, wf, bf)


def _reference(x, y, params):
    """Pure-JAX reference of the PyTorch forward (for validation)."""
    wq, bq, wk, bk, wg, wp, bp, wf, bf = params
    q = x @ wq + bq
    k = y @ wk + bk
    q = q / jnp.maximum(jnp.linalg.norm(q, axis=-1, keepdims=True), EPS)
    k = k / jnp.maximum(jnp.linalg.norm(k, axis=-1, keepdims=True), EPS)
    qw = jnp.sum(q * wg, axis=-1, keepdims=True)          # (B, N, 1)
    A = qw * SCALE
    A = A / jnp.maximum(jnp.linalg.norm(A, axis=1, keepdims=True), EPS)
    G = jnp.sum(A * q, axis=1, keepdims=True)              # (B, 1, HID)
    out = (G * k) @ wp + bp + q
    out = out @ wf + bf
    return out


def _init_params(key):
    ks = jax.random.split(key, 9)
    # Linear weights stored as (in, out) = transpose of torch's (out, in).
    lim_q = 1.0 / jnp.sqrt(IN_DIMS)
    lim_p = 1.0 / jnp.sqrt(HID)
    wq = jax.random.uniform(ks[0], (IN_DIMS, HID), jnp.float32, -lim_q, lim_q)
    bq = jax.random.uniform(ks[1], (1, HID), jnp.float32, -lim_q, lim_q)
    wk = jax.random.uniform(ks[2], (IN_DIMS, HID), jnp.float32, -lim_q, lim_q)
    bk = jax.random.uniform(ks[3], (1, HID), jnp.float32, -lim_q, lim_q)
    wg = jax.random.normal(ks[4], (1, HID), jnp.float32)   # torch.randn(HID,1), transposed
    wp = jax.random.uniform(ks[5], (HID, HID), jnp.float32, -lim_p, lim_p)
    bp = jax.random.uniform(ks[6], (1, HID), jnp.float32, -lim_p, lim_p)
    wf = jax.random.uniform(ks[7], (HID, TOKEN_DIM), jnp.float32, -lim_p, lim_p)
    bf = jax.random.uniform(ks[8], (1, TOKEN_DIM), jnp.float32, -lim_p, lim_p)
    return (wq, bq, wk, bk, wg, wp, bp, wf, bf)


if __name__ == "__main__":
    key = jax.random.PRNGKey(0)
    kx, ky, kp = jax.random.split(key, 3)
    x = jax.random.normal(kx, (B, N, IN_DIMS), jnp.float32)
    y = jax.random.normal(ky, (B, N, IN_DIMS), jnp.float32)
    params = _init_params(kp)

    packed = prepare_params(params)          # one-time weight packing
    out = efficient_additive_attention(x, y, packed)
    out = jax.block_until_ready(out)

    ref = _reference(x, y, params)
    assert out.shape == (B, N, TOKEN_DIM), out.shape
    assert jnp.allclose(out, ref, atol=1e-4, rtol=1e-4), \
        float(jnp.max(jnp.abs(out - ref)))

    print("KERNEL_OK")
</pallas_src>

<mosaic_0001>
module attributes {stable_mosaic.version = 11 : i64} {
  func.func @_eaa_kernel(%arg0: memref<32x32xf32, #tpu.memory_space<vmem>>, %arg1: memref<32x32xf32, #tpu.memory_space<vmem>>, %arg2: memref<32x256xf32, #tpu.memory_space<vmem>>, %arg3: memref<1x256xf32, #tpu.memory_space<vmem>>, %arg4: memref<32x128xf32, #tpu.memory_space<vmem>>, %arg5: memref<1x128xf32, #tpu.memory_space<vmem>>, %arg6: memref<128x128xf32, #tpu.memory_space<vmem>>, %arg7: memref<1x128xf32, #tpu.memory_space<vmem>>, %arg8: memref<128x64xf32, #tpu.memory_space<vmem>>, %arg9: memref<1x64xf32, #tpu.memory_space<vmem>>, %arg10: memref<2x16x64xf32, #tpu.memory_space<vmem>>) attributes {dimension_semantics = [], scalar_prefetch = 0 : i64, scratch_operands = 0 : i64, tpu.core_type = #tpu.core_type<tc>} {
    %c0 = arith.constant 0 : index
    %c0_0 = arith.constant 0 : index
    %0 = vector.load %arg0[%c0, %c0_0] : memref<32x32xf32, #tpu.memory_space<vmem>>, vector<32x32xf32>
    %c0_1 = arith.constant 0 : index
    %c0_2 = arith.constant 0 : index
    %1 = vector.load %arg2[%c0_1, %c0_2] : memref<32x256xf32, #tpu.memory_space<vmem>>, vector<32x256xf32>
    %cst = arith.constant dense<0.000000e+00> : vector<32x256xf32>
    %2 = tpu.matmul %0, %1, %cst {dimension_numbers = #tpu.dot_dimension_numbers<[1], [0], [0], [1], [0, 0, 1, 1], [], []>} : vector<32x32xf32>, vector<32x256xf32>, vector<32x256xf32> -> vector<32x256xf32>
    %c0_3 = arith.constant 0 : index
    %c0_4 = arith.constant 0 : index
    %3 = vector.load %arg3[%c0_3, %c0_4] : memref<1x256xf32, #tpu.memory_space<vmem>>, vector<1x256xf32>
    %4 = vector.broadcast %3 : vector<1x256xf32> to vector<32x256xf32>
    %5 = arith.addf %2, %4 : vector<32x256xf32>
    %6 = vector.extract_strided_slice %5 {offsets = [0, 0], sizes = [32, 128], strides = [1, 1]} : vector<32x256xf32> to vector<32x128xf32>
    %7 = vector.extract_strided_slice %5 {offsets = [0, 128], sizes = [32, 1], strides = [1, 1]} : vector<32x256xf32> to vector<32x1xf32>
    %c0_5 = arith.constant 0 : index
    %c0_6 = arith.constant 0 : index
    %8 = vector.load %arg1[%c0_5, %c0_6] : memref<32x32xf32, #tpu.memory_space<vmem>>, vector<32x32xf32>
    %c0_7 = arith.constant 0 : index
    %c0_8 = arith.constant 0 : index
    %9 = vector.load %arg4[%c0_7, %c0_8] : memref<32x128xf32, #tpu.memory_space<vmem>>, vector<32x128xf32>
    %cst_9 = arith.constant dense<0.000000e+00> : vector<32x128xf32>
    %10 = tpu.matmul %8, %9, %cst_9 {dimension_numbers = #tpu.dot_dimension_numbers<[1], [0], [0], [1], [0, 0, 1, 1], [], []>} : vector<32x32xf32>, vector<32x128xf32>, vector<32x128xf32> -> vector<32x128xf32>
    %c0_10 = arith.constant 0 : index
    %c0_11 = arith.constant 0 : index
    %11 = vector.load %arg5[%c0_10, %c0_11] : memref<1x128xf32, #tpu.memory_space<vmem>>, vector<1x128xf32>
    %12 = vector.broadcast %11 : vector<1x128xf32> to vector<32x128xf32>
    %13 = arith.addf %10, %12 : vector<32x128xf32>
    %14 = arith.mulf %6, %6 : vector<32x128xf32>
    %cst_12 = arith.constant dense<0.000000e+00> : vector<32xf32>
    %15 = vector.multi_reduction <add>, %14, %cst_12 [1] : vector<32x128xf32> to vector<32xf32>
    %16 = vector.shape_cast %15 : vector<32xf32> to vector<32x1xf32>
    %cst_13 = arith.constant 1.000000e-24 : f32
    %17 = vector.broadcast %cst_13 : f32 to vector<32x1xf32>
    %18 = arith.maximumf %16, %17 : vector<32x1xf32>
    %19 = math.rsqrt %18 : vector<32x1xf32>
    %20 = arith.mulf %13, %13 : vector<32x128xf32>
    %cst_14 = arith.constant dense<0.000000e+00> : vector<32xf32>
    %21 = vector.multi_reduction <add>, %20, %cst_14 [1] : vector<32x128xf32> to vector<32xf32>
    %22 = vector.shape_cast %21 : vector<32xf32> to vector<32x1xf32>
    %cst_15 = arith.constant 1.000000e-24 : f32
    %23 = vector.broadcast %cst_15 : f32 to vector<32x1xf32>
    %24 = arith.maximumf %22, %23 : vector<32x1xf32>
    %25 = math.rsqrt %24 : vector<32x1xf32>
    %26 = vector.broadcast %19 : vector<32x1xf32> to vector<32x128xf32>
    %27 = arith.mulf %6, %26 : vector<32x128xf32>
    %28 = vector.broadcast %25 : vector<32x1xf32> to vector<32x128xf32>
    %29 = arith.mulf %13, %28 : vector<32x128xf32>
    %30 = arith.mulf %7, %19 : vector<32x1xf32>
    %31 = vector.shape_cast %27 : vector<32x128xf32> to vector<2x16x128xf32>
    %32 = vector.shape_cast %29 : vector<32x128xf32> to vector<2x16x128xf32>
    %33 = vector.shape_cast %30 : vector<32x1xf32> to vector<2x16x1xf32>
    %34 = arith.mulf %33, %33 : vector<2x16x1xf32>
    %cst_16 = arith.constant dense<0.000000e+00> : vector<2x1xf32>
    %35 = vector.multi_reduction <add>, %34, %cst_16 [1] : vector<2x16x1xf32> to vector<2x1xf32>
    %36 = vector.shape_cast %35 : vector<2x1xf32> to vector<2x1x1xf32>
    %cst_17 = arith.constant 1.000000e-24 : f32
    %37 = vector.broadcast %cst_17 : f32 to vector<2x1x1xf32>
    %38 = arith.maximumf %36, %37 : vector<2x1x1xf32>
    %39 = math.rsqrt %38 : vector<2x1x1xf32>
    %40 = vector.broadcast %39 : vector<2x1x1xf32> to vector<2x16x1xf32>
    %41 = arith.mulf %33, %40 : vector<2x16x1xf32>
    %42 = vector.broadcast %41 : vector<2x16x1xf32> to vector<2x16x128xf32>
    %43 = arith.mulf %42, %31 : vector<2x16x128xf32>
    %cst_18 = arith.constant dense<0.000000e+00> : vector<2x128xf32>
    %44 = vector.multi_reduction <add>, %43, %cst_18 [1] : vector<2x16x128xf32> to vector<2x128xf32>
    %45 = vector.shape_cast %44 : vector<2x128xf32> to vector<2x1x128xf32>
    %46 = vector.broadcast %45 : vector<2x1x128xf32> to vector<2x16x128xf32>
    %47 = arith.mulf %46, %32 : vector<2x16x128xf32>
    %48 = vector.shape_cast %47 : vector<2x16x128xf32> to vector<32x128xf32>
    %c0_19 = arith.constant 0 : index
    %c0_20 = arith.constant 0 : index
    %49 = vector.load %arg6[%c0_19, %c0_20] : memref<128x128xf32, #tpu.memory_space<vmem>>, vector<128x128xf32>
    %cst_21 = arith.constant dense<0.000000e+00> : vector<32x128xf32>
    %50 = tpu.matmul %48, %49, %cst_21 {dimension_numbers = #tpu.dot_dimension_numbers<[1], [0], [0], [1], [0, 0, 1, 1], [], []>} : vector<32x128xf32>, vector<128x128xf32>, vector<32x128xf32> -> vector<32x128xf32>
    %c0_22 = arith.constant 0 : index
    %c0_23 = arith.constant 0 : index
    %51 = vector.load %arg7[%c0_22, %c0_23] : memref<1x128xf32, #tpu.memory_space<vmem>>, vector<1x128xf32>
    %52 = vector.broadcast %51 : vector<1x128xf32> to vector<32x128xf32>
    %53 = arith.addf %50, %52 : vector<32x128xf32>
    %54 = arith.addf %53, %27 : vector<32x128xf32>
    %c0_24 = arith.constant 0 : index
    %c0_25 = arith.constant 0 : index
    %55 = vector.load %arg8[%c0_24, %c0_25] : memref<128x64xf32, #tpu.memory_space<vmem>>, vector<128x64xf32>
    %cst_26 = arith.constant dense<0.000000e+00> : vector<32x64xf32>
    %56 = tpu.matmul %54, %55, %cst_26 {dimension_numbers = #tpu.dot_dimension_numbers<[1], [0], [0], [1], [0, 0, 1, 1], [], []>} : vector<32x128xf32>, vector<128x64xf32>, vector<32x64xf32> -> vector<32x64xf32>
    %c0_27 = arith.constant 0 : index
    %c0_28 = arith.constant 0 : index
    %57 = vector.load %arg9[%c0_27, %c0_28] : memref<1x64xf32, #tpu.memory_space<vmem>>, vector<1x64xf32>
    %58 = vector.broadcast %57 : vector<1x64xf32> to vector<32x64xf32>
    %59 = arith.addf %56, %58 : vector<32x64xf32>
    %60 = vector.shape_cast %59 : vector<32x64xf32> to vector<2x16x64xf32>
    %c0_29 = arith.constant 0 : index
    %c0_30 = arith.constant 0 : index
    %c0_31 = arith.constant 0 : index
    %61 = vector.load %arg10[%c0_29, %c0_30, %c0_31] : memref<2x16x64xf32, #tpu.memory_space<vmem>>, vector<2x16x64xf32>
    tpu.vector_store %arg10[%c0_29, %c0_30, %c0_31], %60 {strides = array<i32>} : memref<2x16x64xf32, #tpu.memory_space<vmem>>, vector<2x16x64xf32>,
    return
  }
}

</mosaic_0001>

<bundles_post_ra>
// kernel: efficient_additive_attention.1
= control target key start
LH: loop header
LB: loop body
LE: loop exit
PB: predicated region body
PF: predicated region fallthrough
CT: control target
= control target key end

     0   :  { %15 = vsyncpa [#allocation3], 0  ;;  %s1386_s0 = inlined_call_operand.hbm [shape: f32[32,32], index: 0, kind: input, shape index: {}]   ;;  %s1387_s1 = inlined_call_operand.hbm [shape: f32[32,32], index: 1, kind: input, shape index: {}]   ;;  %s1388_s2 = inlined_call_operand.vmem [shape: f32[32,256], index: 2, kind: input, shape index: {}]   ;;  %s1389_s3 = inlined_call_operand.vmem [shape: f32[1,256], index: 3, kind: input, shape index: {}]   ;;  %s1390_s4 = inlined_call_operand.hbm [shape: f32[32,128], index: 4, kind: input, shape index: {}]   ;;  %s1391_s5 = inlined_call_operand.vmem [shape: f32[1,128], index: 5, kind: input, shape index: {}]   ;;  %s1392_s6 = inlined_call_operand.vmem [shape: f32[128,128], index: 6, kind: input, shape index: {}]   ;;  %s1393_s7 = inlined_call_operand.vmem [shape: f32[1,128], index: 7, kind: input, shape index: {}]   ;;  %s1394_s8 = inlined_call_operand.vmem [shape: f32[128,64], index: 8, kind: input, shape index: {}]   ;;  %s1395_s9 = inlined_call_operand.vmem [shape: f32[1,64], index: 9, kind: input, shape index: {}]   ;;  %s1396_s10 = inlined_call_operand.hbm [shape: f32[2,16,64], index: 10, kind: output, shape index: {}]  }
   0x1   :  { %16 = vsyncpa [#allocation6], 0 }
   0x2   :  { %17 = vsyncpa [#allocation4], 0  ;;  %s1036_s13 = smov [#allocation5]   ;;  %s1037_s15 = smov [#allocation2]  }
   0x3   :  { %s35_s14 = sshll.u32 %s1036_s13, 4  ;;  %s23_s16 = sshll.u32 %s1037_s15, 4  ;;  %s36_s14 = int_to_ptr.vmem [resolvable:$true] %s35_s14  ;;  %s1099_s16 = int_to_ptr.vmem [resolvable:$true] %s23_s16 }
   0x4   :  { %s942_s19 = scalar_lea.hbm %s1387_s1, 512 }
   0x5   :  { %p943_p0 = scmp.ne.s32.totalorder %s1387_s1, %s942_s19  ;;  %p946_p1 = scmp.lt.u32.totalorder %s942_s19, %s1387_s1 }
   0x7   :  { %p948_p2 = pnand %p946_p1, %p943_p0 }
   0x9   :  { %951 = shalt.err (!%p948_p2)
}
   0xa   :  { %s952_s24 = scalar_lea.vmem %s36_s14, 512  ;;  %p957_p4 = scmp.lt.s32.totalorder %s36_s14, %s36_s14 }
   0xb   :  { %p953_p3 = scmp.ne.s32.totalorder %s36_s14, %s952_s24  ;;  %p958_p5 = scmp.lt.s32.totalorder %s952_s24, %s952_s24 }
   0xd   :  { %p959_p6 = por %p958_p5, %p957_p4 }
   0xf   :  { %p960_p7 = pnand %p959_p6, %p953_p3 }
  0x11   :  { %963 = shalt.err (!%p960_p7)
}
  0x12   :  { %s1038_s25 = smov 128   ;;  %s1039_s26 = smov 8  }
  0x13   :  { %41 = dma.hbm_to_vmem [thread:$0]  %s1387_s1, 512, %s36_s14, [#allocation6], %s1038_s25, %s1038_s25, %s1039_s26  }
  0x14   :  { %s964_s11 = scalar_lea.hbm %s1386_s0, 512 }
  0x15   :  { %p965_p8 = scmp.ne.s32.totalorder %s1386_s0, %s964_s11  ;;  %p968_p9 = scmp.lt.u32.totalorder %s964_s11, %s1386_s0 }
  0x17   :  { %p970_p10 = pnand %p968_p9, %p965_p8 }
  0x19   :  { %973 = shalt.err (!%p970_p10)
}
  0x1a   :  { %s974_s18 = scalar_lea.vmem %s1099_s16, 512  ;;  %p979_p12 = scmp.lt.s32.totalorder %s1099_s16, %s1099_s16 }
  0x1b   :  { %p975_p11 = scmp.ne.s32.totalorder %s1099_s16, %s974_s18  ;;  %p980_p13 = scmp.lt.s32.totalorder %s974_s18, %s974_s18 }
  0x1d   :  { %p981_p0 = por %p980_p13, %p979_p12 }
  0x1f   :  { %p982_p1 = pnand %p981_p0, %p975_p11 }
  0x21   :  { %985 = shalt.err (!%p982_p1)
}
  0x22   :  { %29 = dma.hbm_to_vmem [thread:$0]  %s1386_s0, 512, %s1099_s16, [#allocation3], %s1038_s25, %s1038_s25, %s1039_s26  }
  0x23   :  { %s1040_s19 = smov [#allocation7]   ;;  %s986_s23 = scalar_lea.hbm %s1390_s4, 512 }
  0x24   :  { %s51_s20 = sshll.u32 %s1040_s19, 4  ;;  %p987_p2 = scmp.ne.s32.totalorder %s1390_s4, %s986_s23  ;;  %s52_s20 = int_to_ptr.vmem [resolvable:$true] %s51_s20 }
  0x25   :  { %p990_p3 = scmp.lt.u32.totalorder %s986_s23, %s1390_s4 }
  0x27   :  { %p992_p4 = pnand %p990_p3, %p987_p2 }
  0x29   :  { %995 = shalt.err (!%p992_p4)
}
  0x2a   :  { %s996_s30 = scalar_lea.vmem %s52_s20, 512  ;;  %p1001_p6 = scmp.lt.s32.totalorder %s52_s20, %s52_s20 }
  0x2b   :  { %p997_p5 = scmp.ne.s32.totalorder %s52_s20, %s996_s30  ;;  %p1002_p7 = scmp.lt.s32.totalorder %s996_s30, %s996_s30 }
  0x2d   :  { %p1003_p8 = por %p1002_p7, %p1001_p6 }
  0x2f   :  { %p1004_p9 = pnand %p1003_p8, %p997_p5 }
  0x31   :  { %1007 = shalt.err (!%p1004_p9)
}
  0x32   :  { %57 = dma.hbm_to_vmem [thread:$0]  %s1390_s4, 512, %s52_s20, [#allocation6], %s1038_s25, %s1038_s25, %s1039_s26  }
  0x33   :  { %1030 = dma.done.wait [#allocation3], 512  }
  0x34   :  { %1031 = vsyncadd [#allocation3], 4294966784 }
  0x35   :  { %1032 = dma.done.wait [#allocation6], 1024  }
  0x36   :  { %1033 = vsyncadd [#allocation6], 4294966272  ;;  %v1041_v0 = vmov 0.0   ;;  %v82_v1 = vld [vmem:[%s1388_s2 + $0x8] sm:$0xff]  ;;  %v84_v2 = vld [vmem:[%s1388_s2 + $0x18] sm:$0xff]  ;;  %vm101_vm0 = vcmask 261120   ;;  %v91_v27 = vlaneseq }
  0x37   :  { %178 = vmatprep.mubr.f32.mxu0 %v1041_v0  ;;  %v81_v3 = vld [vmem:[%s1388_s2] sm:$0xff]  ;;  %v832_v4 = vpack.c.bf16 %v84_v2, %v82_v1  ;;  %v83_v5 = vld [vmem:[%s1388_s2 + $0x10] sm:$0xff]  ;;  %v86_v6 = vld [vmem:[%s1388_s2 + $0x28] sm:$0xff]  ;;  %v1042_v61 = vmov 0   ;;  %vm371_vm1 = vcmask 7168   ;;  %vm660_vm2 = vcmask 523264  }
  0x38   :  { %v88_v7 = vld [vmem:[%s1388_s2 + $0x38] sm:$0xff]  ;;  %v834_v8 = vpack.c.bf16 %v83_v5, %v81_v3  ;;  %v85_v10 = vld [vmem:[%s1388_s2 + $0x20] sm:$0xff]  ;;  %v87_v11 = vld [vmem:[%s1388_s2 + $0x30] sm:$0xff]  ;;  %v1183_v28 = vshrl.u32 %v91_v27, 7  ;;  %921 = vset.pattern.permute.xlu1 %v1042_v61  ;;  %920 = vset.pattern.permute.xlu0 %v1042_v61 }
  0x39   :  { %v836_v9 = vpack.c.bf16 %v88_v7, %v86_v6  ;;  %833 = vmatprep.subr.bf16.mxu0 %v832_v4  ;;  %v207_v12 = vld [vmem:[#allocation7] sm:$0xff]  ;;  %v838_v13 = vpack.c.bf16 %v87_v11, %v85_v10  ;;  %v208_v14 = vld [vmem:[#allocation7 + $0x8] sm:$0xff]  ;;  %v209_v15 = vld [vmem:[#allocation7 + $0x10] sm:$0xff] }
  0x3a   :  { %835 = vmatpush1.bf16.msra.mxu0 %v834_v8  ;;  %v840_v16 = vpack.c.bf16 %v208_v14, %v207_v12  ;;  %v210_v17 = vld [vmem:[#allocation7 + $0x18] sm:$0xff]  ;;  %v203_v18 = vld [vmem:[#allocation5] sm:$0xff]  ;;  %v78_v21 = vld [vmem:[#allocation2 + $0x8] sm:$0xff]  ;;  %v93_v29 = vsub.s32 0, %v1183_v28  ;;  %v97_v12 = vsub.s32 1, %v1183_v28 }
  0x3b   :  { %837 = vmatprep.subr.bf16.mxu0 %v836_v9  ;;  %v844_v19 = vpack.c.bf16 %v210_v17, %v209_v15  ;;  %750 = vmatprep.mubr.msk.f32.mxu1 %vm101_vm0, %v203_v18  ;;  %v77_v20 = vld [vmem:[#allocation2] sm:$0xff]  ;;  %v204_v22 = vld [vmem:[#allocation5 + $0x8] sm:$0xff]  ;;  %v205_v23 = vld [vmem:[#allocation5 + $0x10] sm:$0xff] }
  0x3c   :  { %841 = vmatprep.subr.bf16.mxu1 %v840_v16  ;;  %v79_v24 = vld [vmem:[#allocation2 + $0x10] sm:$0xff]  ;;  %v206_v25 = vld [vmem:[#allocation5 + $0x18] sm:$0xff]  ;;  %v1189_v30 = vld [vmem:[%s1389_s3] sm:$0x3] }
  0x3d   :  { %843 = vmatpush3.bf16.msra.mxu1 %v840_v16  ;;  %v80_v26 = vld [vmem:[#allocation2 + $0x18] sm:$0xff]  ;;  %v94_v31 = vrot.slane %v1189_v30, %v93_v29  ;;  %v687_v36 = vld [vmem:[%s1391_s5] ss:$0 sm:$0xff]  ;;  %v441_v63 = vld [vmem:[%s1392_s6 + $0x8] sm:$0xff]  ;;  %v98_v15 = vrot.slane %v1189_v30, %v97_v12 }
  0x3e   :  { %839 = vmatpush1.bf16.msra.mxu0 %v838_v13  ;;  %845 = vmatprep.subr.bf16.mxu1 %v844_v19  ;;  %v440_v62 = vld [vmem:[%s1392_s6] sm:$0xff]  ;;  %v443_v2 = vld [vmem:[%s1392_s6 + $0x18] sm:$0xff]  ;;  %v445_v5 = vld [vmem:[%s1392_s6 + $0x28] sm:$0xff] }
  0x3f   :  { %v848_v1 = vpack.c.bf16 %v441_v63, %v440_v62  ;;  %v444_v4 = vld [vmem:[%s1392_s6 + $0x20] sm:$0xff]  ;;  %v446_v7 = vld [vmem:[%s1392_s6 + $0x30] sm:$0xff]  ;;  %v447_v8 = vld [vmem:[%s1392_s6 + $0x38] sm:$0xff] }
  0x40   :  { %v856_v6 = vpack.c.bf16 %v445_v5, %v444_v4  ;;  %v860_v9 = vpack.c.bf16 %v447_v8, %v446_v7  ;;  %v449_v4 = vld [vmem:[%s1392_s6 + $0x48] sm:$0xff]  ;;  %v451_v7 = vld [vmem:[%s1392_s6 + $0x58] sm:$0xff]  ;;  %v452_v12 = vld [vmem:[%s1392_s6 + $0x60] sm:$0xff] }
  0x41   :  { %683 = vmatmul.mubr.msk.f32.vlgmr.msra.gmra.mrb[0].mxu0 %vm101_vm0, %v77_v20  ;;  %847 = vmatpush3.bf16.msra.mxu1 %v844_v19 }
  0x42   :  { %184 = vmatprep.mubr.f32.mxu0 %v1041_v0  ;;  %849 = vmatprep.subr.bf16.mxu0 %v848_v1 }
  0x43   :  { %851 = vmatpush3.bf16.msra.mxu0 %v848_v1 }
  0x44   :  { %751 = vmatmul.mubr.msk.f32.vlgmr.msra.gmra.mrb[0].mxu1 %vm101_vm0, %v204_v22 }
  0x45   :  { %684 = vmatmul.mubr.msk.f32.gmra.mrb[2].mxu0 %vm101_vm0, %v78_v21  ;;  %753 = vmatprep.mubr.msk.f32.mxu1 %vm101_vm0, %v205_v23 }
  0x46   :  { %190 = vmatprep.mubr.f32.mxu0 %v1041_v0 }
  0x48   :  { %754 = vmatmul.mubr.msk.f32.gmra.mrb[2].mxu1 %vm101_vm0, %v206_v25 }
  0x49   :  { %685 = vmatmul.mubr.msk.f32.gmra.mrb[4].mxu0 %vm101_vm0, %v79_v24 }
  0x4a   :  { %196 = vmatprep.mubr.f32.mxu0 %v1041_v0  ;;  %v442_v0 = vld [vmem:[%s1392_s6 + $0x10] sm:$0xff] }
  0x4b   :  { %v852_v3 = vpack.c.bf16 %v443_v2, %v442_v0 }
  0x4d   :  { %686 = vmatmul.mubr.msk.f32.gmra.mrb[6].mxu0 %vm101_vm0, %v80_v26  ;;  %853 = vmatprep.subr.bf16.mxu0 %v852_v3 }
  0x4e   :  { %855 = vmatpush3.bf16.msra.mxu0 %v852_v3  ;;  %v448_v3 = vld [vmem:[%s1392_s6 + $0x40] sm:$0xff] }
  0x4f   :  { %857 = vmatprep.subr.bf16.mxu0 %v856_v6  ;;  %v864_v5 = vpack.c.bf16 %v449_v4, %v448_v3 }
  0x52   :  { %859 = vmatpush3.bf16.msra.mxu0 %v856_v6  ;;  %v450_v6 = vld [vmem:[%s1392_s6 + $0x50] sm:$0xff] }
  0x53   :  { %861 = vmatprep.subr.bf16.mxu0 %v860_v9 }
  0x56   :  { %863 = vmatpush3.bf16.msra.mxu0 %v860_v9  ;;  %v868_v9 = vpack.c.bf16 %v451_v7, %v450_v6 }
  0x57   :  { %865 = vmatprep.subr.bf16.mxu0 %v864_v5 }
  0x5a   :  { %867 = vmatpush3.bf16.msra.mxu0 %v864_v5 }
  0x5b   :  { %869 = vmatprep.subr.bf16.mxu0 %v868_v9 }
  0x5e   :  { %871 = vmatpush3.bf16.msra.mxu0 %v868_v9 }
 0x114   :  { %v180_v32 = vpop.f32.mrb[0].mxu0 }
 0x115   :  { %v1192_v33 = vadd.f32 %v180_v32, %v94_v31  ;;  %v1194_v34 = vpop.f32.mrb[1].mxu0 }
 0x116   :  { %v183_v18 = vadd.f32 %v1194_v34, %v98_v15 }
 0x117   :  { %v315_v35 = vmul.f32 %v1192_v33, %v1192_v33  ;;  %v752_v38 = vpop.f32.mrb[0].mxu1 }
 0x118   :  { %v186_v37 = vpop.f32.mrb[2].mxu0  ;;  %v296_v41 = vpop.f32.mrb[1].mxu1  ;;  %v1223_v55 = vadd.f32 %v752_v38, %v687_v36 }
 0x119   :  { %v1201_v39 = vadd.f32 %v186_v37, %v94_v31  ;;  %v1203_v40 = vpop.f32.mrb[3].mxu0  ;;  %319 = vadd.xlane.f32.xlu0 %v315_v35  ;;  %v1205_v42 = vadd.f32 %v687_v36, %v296_v41 }
 0x11a   :  { %v336_v59 = vmul.f32 %v1223_v55, %v1223_v55  ;;  %v189_v23 = vadd.f32 %v1203_v40, %v98_v15 }
 0x11b   :  { %v316_v43 = vmul.f32 %v1201_v39, %v1201_v39  ;;  %v755_v45 = vpop.f32.mrb[2].mxu1  ;;  %v335_v49 = vmul.f32 %v1205_v42, %v1205_v42 }
 0x11c   :  { %v192_v44 = vpop.f32.mrb[4].mxu0  ;;  %v306_v48 = vpop.f32.mrb[3].mxu1  ;;  %v1229_v58 = vadd.f32 %v755_v45, %v687_v36 }
 0x11d   :  { %v1209_v46 = vadd.f32 %v192_v44, %v94_v31  ;;  %v1211_v47 = vpop.f32.mrb[5].mxu0  ;;  %321 = vadd.xlane.f32.xlu0 %v316_v43  ;;  %v1215_v50 = vadd.f32 %v687_v36, %v306_v48 }
 0x11e   :  { %v338_v60 = vmul.f32 %v1229_v58, %v1229_v58  ;;  %v195_v27 = vadd.f32 %v1211_v47, %v98_v15 }
 0x11f   :  { %v317_v51 = vmul.f32 %v1209_v46, %v1209_v46  ;;  %v337_v56 = vmul.f32 %v1215_v50, %v1215_v50 }
 0x120   :  { %v198_v52 = vpop.f32.mrb[6].mxu0 }
 0x121   :  { %v1219_v53 = vadd.f32 %v198_v52, %v94_v31  ;;  %v1221_v54 = vpop.f32.mrb[7].mxu0  ;;  %323 = vadd.xlane.f32.xlu1 %v317_v51  ;;  %339 = vadd.xlane.f32.xlu0 %v335_v49 }
 0x122   :  { %v201_v35 = vadd.f32 %v1221_v54, %v98_v15  ;;  %v454_v15 = vld [vmem:[%s1392_s6 + $0x70] sm:$0xff] }
 0x123   :  { %v318_v57 = vmul.f32 %v1219_v53, %v1219_v53 }
 0x125   :  { %325 = vadd.xlane.f32.xlu1 %v318_v57  ;;  %343 = vadd.xlane.f32.xlu0 %v337_v56 }
 0x129   :  { %341 = vadd.xlane.f32.xlu1 %v336_v59 }
 0x12d   :  { %345 = vadd.xlane.f32.xlu1 %v338_v60 }
 0x1a6   :  { %v320_v10 = vpop.xlane.xlu0 %319 }
 0x1a7   :  { %v327_v11 = vmax.f32 %v320_v10, 1e-24 }
 0x1a9   :  { %922 = vrsqrt.f32 %v327_v11 }
 0x1aa   :  { %v322_v13 = vpop.xlane.xlu0 %321 }
 0x1ab   :  { %v328_v14 = vmax.f32 %v322_v13, 1e-24  ;;  %v453_v13 = vld [vmem:[%s1392_s6 + $0x68] sm:$0xff] }
 0x1ad   :  { %924 = vrsqrt.f32 %v328_v14  ;;  %v872_v14 = vpack.c.bf16 %v453_v13, %v452_v12 }
 0x1ae   :  { %v324_v16 = vpop.xlane.xlu1 %323 }
 0x1af   :  { %v329_v17 = vmax.f32 %v324_v16, 1e-24  ;;  %873 = vmatprep.subr.bf16.mxu0 %v872_v14  ;;  %v455_v16 = vld [vmem:[%s1392_s6 + $0x78] sm:$0xff] }
 0x1b0   :  { %875 = vmatpush3.bf16.msra.mxu0 %v872_v14 }
 0x1b1   :  { %926 = vrsqrt.f32 %v329_v17  ;;  %v876_v17 = vpack.c.bf16 %v455_v16, %v454_v15 }
 0x1b2   :  { %v326_v19 = vpop.xlane.xlu1 %325 }
 0x1b3   :  { %v1262_v20 = vpop.eup %922  ;;  %v330_v21 = vmax.f32 %v326_v19, 1e-24  ;;  %877 = vmatprep.subr.bf16.mxu0 %v876_v17  ;;  %v553_v19 = vld [vmem:[%s1394_s8 + $0x8] sm:$0xff] }
 0x1b4   :  { %v363_v22 = vmul.f32 %v1262_v20, %v183_v18  ;;  %879 = vmatpush3.bf16.msra.mxu0 %v876_v17  ;;  %v552_v18 = vld [vmem:[%s1394_s8] sm:$0xff] }
 0x1b5   :  { %928 = vrsqrt.f32 %v330_v21  ;;  %v554_v21 = vld [vmem:[%s1394_s8 + $0x10] sm:$0xff] }
 0x1b6   :  { %v367_v26 = vmul.f32 %v363_v22, %v363_v22 }
 0x1b7   :  { %v1266_v24 = vpop.eup %924 }
 0x1b8   :  { %v364_v25 = vmul.f32 %v1266_v24, %v189_v23  ;;  %v372_v30 = vsel %vm371_vm1, %v367_v26, 0.0  ;;  %v555_v23 = vld [vmem:[%s1394_s8 + $0x18] sm:$0xff]  ;;  %v556_v26 = vld [vmem:[%s1394_s8 + $0x20] sm:$0xff] }
 0x1ba   :  { %v368_v28 = vmul.f32 %v364_v25, %v364_v25 }
 0x1bb   :  { %v1270_v29 = vpop.eup %926 }
 0x1bc   :  { %v373_v31 = vsel %vm371_vm1, %v368_v28, 0.0  ;;  %v365_v32 = vmul.f32 %v1270_v29, %v195_v27  ;;  %v557_v27 = vld [vmem:[%s1394_s8 + $0x28] sm:$0xff] }
 0x1bd   :  { %v374_v34 = vadd.f32 %v373_v31, %v372_v30  ;;  %v888_v28 = vpack.c.bf16 %v557_v27, %v556_v26  ;;  %v558_v30 = vld [vmem:[%s1394_s8 + $0x30] sm:$0xff]  ;;  %v559_v31 = vld [vmem:[%s1394_s8 + $0x38] sm:$0xff] }
 0x1be   :  { %v369_v40 = vmul.f32 %v365_v32, %v365_v32  ;;  %v567_v26 = vld [vmem:[%s1394_s8 + $0x78] sm:$0xff] }
 0x1bf   :  { %v1276_v36 = vpop.eup %928  ;;  %v375_v37 = vrot.slane %v374_v34, 4 }
 0x1c0   :  { %v366_v38 = vmul.f32 %v1276_v36, %v201_v35  ;;  %v381_v45 = vsel %vm371_vm1, %v369_v40, 0.0  ;;  %v561_v35 = vld [vmem:[%s1394_s8 + $0x48] sm:$0xff]  ;;  %v563_v40 = vld [vmem:[%s1394_s8 + $0x58] sm:$0xff] }
 0x1c1   :  { %v376_v41 = vadd.f32 %v375_v37, %v374_v34  ;;  %v560_v34 = vld [vmem:[%s1394_s8 + $0x40] sm:$0xff] }
 0x1c2   :  { %v370_v43 = vmul.f32 %v366_v38, %v366_v38  ;;  %v896_v37 = vpack.c.bf16 %v561_v35, %v560_v34 }
 0x1c3   :  { %v377_v44 = vrot.slane %v376_v41, 2 }
 0x1c4   :  { %v382_v47 = vsel %vm371_vm1, %v370_v43, 0.0  ;;  %v564_v43 = vld [vmem:[%s1394_s8 + $0x60] sm:$0xff] }
 0x1c5   :  { %v378_v48 = vadd.f32 %v377_v44, %v376_v41  ;;  %v383_v49 = vadd.f32 %v382_v47, %v381_v45  ;;  %v565_v44 = vld [vmem:[%s1394_s8 + $0x68] sm:$0xff]  ;;  %v342_v47 = vpop.xlane.xlu1 %341 }
 0x1c6   :  { %v904_v45 = vpack.c.bf16 %v565_v44, %v564_v43  ;;  %v693_v44 = vld [vmem:[%s1395_s9] ss:$0 sm:$0xff] }
 0x1c7   :  { %v379_v51 = vrot.slane %v378_v48, 1  ;;  %v384_v52 = vrot.slane %v383_v49, 4 }
 0x1c9   :  { %v380_v56 = vadd.f32 %v379_v51, %v378_v48  ;;  %v385_v57 = vadd.f32 %v384_v52, %v383_v49  ;;  %v340_v48 = vpop.xlane.xlu0 %339  ;;  %v346_v49 = vpop.xlane.xlu1 %345 }
 0x1ca   :  { %v347_v52 = vmax.f32 %v340_v48, 1e-24  ;;  %v350_v5 = vmax.f32 %v346_v49, 1e-24 }
 0x1cb   :  { %v390_v54 = vmax.f32 %v380_v56, 1e-24  ;;  %v386_v59 = vrot.slane %v385_v57, 2  ;;  %v348_v56 = vmax.f32 %v342_v47, 1e-24 }
 0x1cd   :  { %930 = vrsqrt.f32 %v390_v54  ;;  %v387_v60 = vadd.f32 %v386_v59, %v385_v57  ;;  %v344_v51 = vpop.xlane.xlu0 %343  ;;  %v356_v57 = vmul.f32 %v1266_v24, %v1201_v39  ;;  %v355_v54 = vmul.f32 %v1262_v20, %v1192_v33 }
 0x1ce   :  { %v349_v3 = vmax.f32 %v344_v51, 1e-24  ;;  %v357_v39 = vmul.f32 %v1270_v29, %v1209_v46  ;;  %v358_v33 = vmul.f32 %v1276_v36, %v1219_v53 }
 0x1cf   :  { %v388_v61 = vrot.slane %v387_v60, 1 }
 0x1d1   :  { %v389_v62 = vadd.f32 %v388_v61, %v387_v60 }
 0x1d3   :  { %v391_v63 = vmax.f32 %v389_v62, 1e-24 }
 0x1d5   :  { %932 = vrsqrt.f32 %v391_v63 }
 0x1d6   :  { %934 = vrsqrt.f32 %v347_v52 }
 0x1d7   :  { %v931_v0 = vpop.eup %930  ;;  %936 = vrsqrt.f32 %v348_v56 }
 0x1d8   :  { %v395_v1 = vmul.f32 %v931_v0, %v364_v25  ;;  %v394_v2 = vmul.f32 %v931_v0, %v363_v22  ;;  %v880_v22 = vpack.c.bf16 %v553_v19, %v552_v18  ;;  %v884_v25 = vpack.c.bf16 %v555_v23, %v554_v21 }
 0x1d9   :  { %938 = vrsqrt.f32 %v349_v3 }
 0x1da   :  { %405 = vperm.xlu1 %921, %v395_v1   ;;  %400 = vperm.xlu0 %920, %v394_v2   ;;  %940 = vrsqrt.f32 %v350_v5 }
 0x1db   :  { %881 = vmatprep.subr.bf16.mxu1 %v880_v22 }
 0x1dc   :  { %883 = vmatpush3.bf16.msra.mxu1 %v880_v22 }
 0x1dd   :  { %885 = vmatprep.subr.bf16.mxu1 %v884_v25 }
 0x1df   :  { %v933_v8 = vpop.eup %932 }
 0x1e0   :  { %v396_v10 = vmul.f32 %v933_v8, %v365_v32  ;;  %v397_v11 = vmul.f32 %v933_v8, %v366_v38  ;;  %887 = vmatpush3.bf16.msra.mxu1 %v884_v25  ;;  %v892_v32 = vpack.c.bf16 %v559_v31, %v558_v30  ;;  %v562_v38 = vld [vmem:[%s1394_s8 + $0x50] sm:$0xff]  ;;  %v935_v6 = vpop.eup %934 }
 0x1e1   :  { %889 = vmatprep.subr.bf16.mxu1 %v888_v28  ;;  %v900_v41 = vpack.c.bf16 %v563_v40, %v562_v38  ;;  %v937_v20 = vpop.eup %936  ;;  %v359_v12 = vmul.f32 %v935_v6, %v1205_v42 }
 0x1e2   :  { %410 = vperm.xlu1 %921, %v396_v10   ;;  %v360_v13 = vmul.f32 %v937_v20, %v1223_v55  ;;  %v566_v55 = vld [vmem:[%s1394_s8 + $0x70] sm:$0xff] }
 0x1e3   :  { %v939_v29 = vpop.eup %938  ;;  %v908_v27 = vpack.c.bf16 %v567_v26, %v566_v55 }
 0x1e4   :  { %891 = vmatpush3.bf16.msra.mxu1 %v888_v28  ;;  %v941_v18 = vpop.eup %940  ;;  %v361_v21 = vmul.f32 %v939_v29, %v1215_v50  ;;  %v692_v50 = vld [vmem:[%s1393_s7] ss:$0 sm:$0xff]  ;;  %s1043_s7 = smov [#allocation8]  }
 0x1e5   :  { %893 = vmatprep.subr.bf16.mxu1 %v892_v32  ;;  %v362_v23 = vmul.f32 %v941_v18, %v1229_v58  ;;  %s670_s23 = sshll.u32 %s1043_s7, 4  ;;  %s671_s23 = int_to_ptr.vmem [resolvable:$true] %s670_s23 }
 0x1e6   :  { %415 = vperm.xlu1 %921, %v397_v11   ;;  %s1008_s24 = scalar_lea.vmem %s671_s23, 512  ;;  %p1013_p11 = scmp.lt.s32.totalorder %s671_s23, %s671_s23 }
 0x1e7   :  { %p1009_p10 = scmp.ne.s32.totalorder %s671_s23, %s1008_s24  ;;  %p1014_p12 = scmp.lt.s32.totalorder %s1008_s24, %s1008_s24 }
 0x1e8   :  { %895 = vmatpush3.bf16.msra.mxu1 %v892_v32 }
 0x1e9   :  { %897 = vmatprep.subr.bf16.mxu1 %v896_v37  ;;  %p1015_p13 = por %p1014_p12, %p1013_p11 }
 0x1eb   :  { %p1016_p0 = pnand %p1015_p13, %p1009_p10 }
 0x1ec   :  { %899 = vmatpush3.bf16.msra.mxu1 %v896_v37 }
 0x1ed   :  { %901 = vmatprep.subr.bf16.mxu1 %v900_v41 }
 0x1f0   :  { %903 = vmatpush3.bf16.msra.mxu1 %v900_v41 }
 0x1f1   :  { %905 = vmatprep.subr.bf16.mxu1 %v904_v45 }
 0x1f4   :  { %907 = vmatpush3.bf16.msra.mxu1 %v904_v45 }
 0x1f5   :  { %909 = vmatprep.subr.bf16.mxu1 %v908_v27 }
 0x1f8   :  { %911 = vmatpush3.bf16.msra.mxu1 %v908_v27 }
 0x259   :  { %v406_v59 = vpop.permute.xlu1 %405  ;;  %v401_v60 = vpop.permute.xlu0 %400 }
 0x25a   :  { %v419_v61 = vmul.f32 %v406_v59, %v356_v57  ;;  %v418_v62 = vmul.f32 %v401_v60, %v355_v54 }
 0x25c   :  { %v422_v63 = vadd.f32 %v419_v61, %v418_v62 }
 0x25e   :  { %v423_v0 = vrot.slane %v422_v63, 4 }
 0x260   :  { %v424_v1 = vadd.f32 %v423_v0, %v422_v63 }
 0x261   :  { %v411_v2 = vpop.permute.xlu1 %410 }
 0x262   :  { %v425_v4 = vrot.slane %v424_v1, 2  ;;  %v420_v8 = vmul.f32 %v411_v2, %v357_v39 }
 0x264   :  { %v426_v7 = vadd.f32 %v425_v4, %v424_v1 }
 0x265   :  { %v416_v24 = vpop.permute.xlu1 %415 }
 0x266   :  { %v421_v9 = vmul.f32 %v416_v24, %v358_v33  ;;  %v427_v10 = vrot.slane %v426_v7, 1 }
 0x268   :  { %v429_v11 = vadd.f32 %v421_v9, %v420_v8  ;;  %v428_v14 = vadd.f32 %v427_v10, %v426_v7 }
 0x26a   :  { %v430_v15 = vrot.slane %v429_v11, 4  ;;  %v436_v16 = vmul.f32 %v428_v14, %v359_v12  ;;  %v437_v17 = vmul.f32 %v428_v14, %v360_v13 }
 0x26c   :  { %v431_v46 = vadd.f32 %v430_v15, %v429_v11  ;;  %788 = vmatprep.mubr.f32.mxu0 %v436_v16 }
 0x26d   :  { %789 = vmatmul.mubr.f32.vlgmr.msra.gmra.mrb[8].mxu0 %v437_v17 }
 0x26e   :  { %v432_v53 = vrot.slane %v431_v46, 2 }
 0x270   :  { %v433_v36 = vadd.f32 %v432_v53, %v431_v46 }
 0x272   :  { %v434_v19 = vrot.slane %v433_v36, 1 }
 0x274   :  { %v435_v22 = vadd.f32 %v434_v19, %v433_v36 }
 0x276   :  { %v438_v42 = vmul.f32 %v435_v22, %v361_v21  ;;  %v439_v25 = vmul.f32 %v435_v22, %v362_v23 }
 0x278   :  { %791 = vmatprep.mubr.f32.mxu0 %v438_v42 }
 0x279   :  { %792 = vmatmul.mubr.f32.gmra.mrb[10].mxu0 %v439_v25 }
 0x340   :  { %v790_v58 = vpop.f32.mrb[8].mxu0 }
 0x341   :  { %v535_v28 = vadd.f32 %v790_v58, %v692_v50  ;;  %v529_v30 = vpop.f32.mrb[9].mxu0 }
 0x342   :  { %v530_v31 = vadd.f32 %v692_v50, %v529_v30 }
 0x343   :  { %v549_v34 = vadd.f32 %v535_v28, %v356_v57 }
 0x344   :  { %v548_v32 = vadd.f32 %v530_v31, %v355_v54 }
 0x346   :  { %826 = vmatprep.mubr.f32.mxu1 %v548_v32 }
 0x347   :  { %827 = vmatmul.mubr.f32.vlgmr.msra.gmra.mrb[4].mxu1 %v549_v34 }
 0x34c   :  { %v793_v35 = vpop.f32.mrb[10].mxu0 }
 0x34d   :  { %v545_v37 = vadd.f32 %v793_v35, %v692_v50  ;;  %v539_v38 = vpop.f32.mrb[11].mxu0 }
 0x34e   :  { %v540_v40 = vadd.f32 %v692_v50, %v539_v38 }
 0x34f   :  { %v551_v43 = vadd.f32 %v545_v37, %v358_v33 }
 0x350   :  { %v550_v41 = vadd.f32 %v540_v40, %v357_v39 }
 0x352   :  { %829 = vmatprep.mubr.f32.mxu1 %v550_v41 }
 0x353   :  { %830 = vmatmul.mubr.f32.gmra.mrb[6].mxu1 %v551_v43 }
 0x41a   :  { %v828_v45 = vpop.f32.mrb[4].mxu1 }
 0x41b   :  { %v647_v47 = vadd.f32 %v828_v45, %v693_v44  ;;  %v641_v48 = vpop.f32.mrb[5].mxu1 }
 0x41c   :  { %v642_v49 = vadd.f32 %v693_v44, %v641_v48 }
 0x41d   :  { %662 = vst.msk [vmem:[#allocation8 + $0x8] sm:$0xff] %vm660_vm2, %v647_v47 }
 0x41e   :  { %661 = vst.msk [vmem:[#allocation8] sm:$0xff] %vm660_vm2, %v642_v49 }
 0x426   :  { %v831_v51 = vpop.f32.mrb[6].mxu1 }
 0x427   :  { %v657_v52 = vadd.f32 %v831_v51, %v693_v44  ;;  %v651_v56 = vpop.f32.mrb[7].mxu1 }
 0x428   :  { %v652_v57 = vadd.f32 %v693_v44, %v651_v56 }
 0x429   :  { %664 = vst.msk [vmem:[#allocation8 + $0x18] sm:$0xff] %vm660_vm2, %v657_v52 }
 0x42a   :  { %663 = vst.msk [vmem:[#allocation8 + $0x10] sm:$0xff] %vm660_vm2, %v652_v57 }
 0x42b   :  { %1019 = shalt.err (!%p1016_p0)
}
 0x42c   :  { %s1020_s2 = scalar_lea.hbm %s1396_s10, 512 }
 0x42d   :  { %p1021_p1 = scmp.ne.s32.totalorder %s1396_s10, %s1020_s2  ;;  %p1024_p2 = scmp.lt.u32.totalorder %s1020_s2, %s1396_s10 }
 0x42f   :  { %p1026_p3 = pnand %p1024_p2, %p1021_p1 }
 0x431   :  { %1029 = shalt.err (!%p1026_p3)
}
 0x432   :  { %676 = dma.vmem_to_hbm [thread:$0]  %s671_s23, 512, %s1396_s10, [#allocation4], %s1038_s25, %s1038_s25, %s1039_s26  }
 0x433   :  { %1034 = dma.done.wait [#allocation4], 512  }
 0x434   :  { %1035 = vsyncadd [#allocation4], 4294966784 }
 0x435   :  { %680 = vsyncpa [#allocation3], 1 }
 0x436   :  { %681 = vsyncpa [#allocation6], 1 }
 0x437   :  { %682 = vsyncpa [#allocation4], 1 }

</bundles_post_ra>
